<compile_context>
chip_gen: v7x
topology: tpu7x:2x2x1
jax: 0.10.0
libtpu: 0.0.40
codegen_flags: <defaults>
</compile_context>

<pallas_src>
import math
from functools import partial

import jax
import jax.numpy as jnp
from jax.experimental import pallas as pl
from jax.experimental.pallas import tpu as pltpu


def _cross_attn_kernel(v_ref, wq_ref, m_ref, o_ref, *, n_head):
    # v_ref:  (bb, T, d_in)          block of batch elements (native dtype)
    # wq_ref: (d_in, n_head*nq)      fused (scaled) query/weight matrix, resident
    # m_ref:  (bb, 1, T) float32     1.0 = valid position
    # o_ref:  (bb, 1, nq*d_in)       lane-dense output block
    v = v_ref[...]                                        # (bb, T, d_in)
    bb, t, d_in = v.shape
    hq = wq_ref.shape[1]
    nq = hq // n_head
    d_v = d_in // n_head

    # --- fused score matmul: one MXU pass for all heads / queries ------------
    # s[b*T, h*nq+q] = sum_c v[b,t,c] * Wq[h,q,c]   (== (q/sqrt(dk)) . k^T)
    s = jnp.dot(v.reshape(bb * t, d_in), wq_ref[...],
                preferred_element_type=jnp.float32)       # (bb*T, H*nq) f32
    s = jnp.swapaxes(s.reshape(bb, t, hq), 1, 2)          # (bb, H*nq, T) f32

    # additive pad-mask bias, implicit broadcast over the (head*query) axis
    neg = jnp.where(m_ref[...] > 0.5, jnp.float32(0.0), jnp.float32(-1e30))
    s = s + neg                                           # (bb, H*nq, T)

    # softmax over T (lane axis), f32, exact normalization
    s_max = jnp.max(s, axis=-1, keepdims=True)
    p = jnp.exp(s - s_max)
    attn = (p / jnp.sum(p, axis=-1, keepdims=True)).astype(v.dtype)  # (bb, H*nq, T)

    # --- per-head attn @ v_h (tiny), heads assembled into ONE store ----------
    # TODO(synk): fuse across heads into a single matmul / fori_loop if n_head
    # grows; for long T add a T grid axis with an online-softmax accumulator.
    outs = []
    for h in range(n_head):                               # small static unroll
        a_h = attn[:, h * nq:(h + 1) * nq, :]             # (bb, nq, T)
        v_h = v[:, :, h * d_v:(h + 1) * d_v]              # (bb, T, d_v)
        outs.append(jnp.einsum('bqt,btv->bqv', a_h, v_h,
                               preferred_element_type=jnp.float32))
    out = jnp.concatenate(outs, axis=-1)                  # (bb, nq, d_in) f32

    # lane-dense single store: (bb, nq*d_in) lanes (no 8-lane-wide slice stores)
    out_wide = jnp.concatenate([out[:, i, :] for i in range(nq)], axis=-1)
    o_ref[:, 0, :] = out_wide.astype(o_ref.dtype)


def _pick_block_b(b, t, d_in, nq, n_head, itemsize, *,
                  vmem_budget_bytes=40 << 20, min_steps=4):
    """Largest batch block whose double-buffered input/output blocks plus f32
    temporaries fit the VMEM budget while leaving >= min_steps grid steps for
    pipelining (and work for both TensorCores on v7x)."""
    hq = n_head * nq

    def fits(bb):
        v_b = bb * t * d_in * itemsize
        m_b = bb * t * 4
        o_b = bb * nq * d_in * itemsize
        tmp = bb * (2 * t * hq + nq * d_in) * 4            # s/p/attn/out temporaries
        return 2 * (v_b + m_b + o_b) + tmp <= vmem_budget_bytes

    divisors = [d for d in range(b, 0, -1) if b % d == 0]
    want_steps = min(min_steps, b)
    for bb in divisors:                                    # prefer pipelinable grid
        if fits(bb) and (b // bb) >= want_steps:
            return bb
    for bb in divisors:                                    # fall back: just fit VMEM
        if fits(bb):
            return bb
    return 1


def cross_attn(v, q, w_k_t, pad_mask=None, *, n_head, d_k, block_b=None,
               vmem_limit_bytes=48 * 1024 * 1024):
    """v: (B,T,d_in); q: (n_head,nq,d_k); w_k_t: (d_in, n_head*d_k) (= fc1_k
    weight transposed so k = v @ w_k_t); pad_mask: (B,T) bool, True = attend.
    Returns (B, nq, d_in).  Note: each row should have >= 1 valid position."""
    b, t, d_in = v.shape
    nq = q.shape[1]
    assert q.shape == (n_head, nq, d_k)
    assert w_k_t.shape == (d_in, n_head * d_k)
    assert d_in % n_head == 0

    # --- algebraic fusion: fold fc1_k (and 1/sqrt(d_k)) into the shared q ----
    # s[b,h,q,t] = sum_c v[b,t,c] * Wq[h,q,c],   Wq[h,q,c] = sum_d W^T[c,hd] q[h,q,d]/sqrt(dk)
    w_heads = w_k_t.reshape(d_in, n_head, d_k)                       # (c, h, d)
    wq = jnp.einsum('chd,hqd->hqc', w_heads, q) * (1.0 / math.sqrt(d_k))
    wq_t = wq.reshape(n_head * nq, d_in).T.astype(v.dtype)           # (d_in, H*nq)

    if pad_mask is None:
        pad_mask = jnp.ones((b, t), dtype=bool)
    mask3 = pad_mask.astype(jnp.float32).reshape(b, 1, t)            # (B, 1, T)

    if block_b is None:
        block_b = _pick_block_b(b, t, d_in, nq, n_head, v.dtype.itemsize)
    assert b % block_b == 0, "batch must be divisible by block_b"

    hq = n_head * nq
    out_flat = pl.pallas_call(
        partial(_cross_attn_kernel, n_head=n_head),
        out_shape=jax.ShapeDtypeStruct((b, 1, nq * d_in), v.dtype),
        grid=(b // block_b,),
        in_specs=[
            pl.BlockSpec((block_b, t, d_in), lambda i: (i, 0, 0)),   # v block
            pl.BlockSpec((d_in, hq), lambda i: (0, 0)),              # fused Wq, resident
            pl.BlockSpec((block_b, 1, t), lambda i: (i, 0, 0)),      # pad mask block
        ],
        out_specs=pl.BlockSpec((block_b, 1, nq * d_in), lambda i: (i, 0, 0)),
        compiler_params=pltpu.CompilerParams(
            dimension_semantics=("parallel",),
            # <= ~48 MiB keeps the block sizing valid on v7x (64 MiB/TC);
            # on v6e/v5e this may be raised together with the block budget.
            vmem_limit_bytes=vmem_limit_bytes,
        ),
    )(v, wq_t, mask3)
    return out_flat.reshape(b, nq, d_in)


if __name__ == "__main__":
    # Small shapes consistent with the module's forward.
    B, T, D_IN = 16, 16, 32
    N_HEAD, D_K = 4, 8
    NQ = 8
    D_V = D_IN // N_HEAD

    key = jax.random.PRNGKey(0)
    kv, kq, kw, km = jax.random.split(key, 4)

    v = jax.random.normal(kv, (B, T, D_IN), jnp.float32)
    q = jax.random.normal(kq, (N_HEAD, NQ, D_K), jnp.float32)

    # fc1_k = nn.Linear(d_in, n_head*d_k, bias=False): torch weight is
    # (n_head*d_k, d_in); we keep its transpose so k = v @ w_k_t.
    w_torch = jax.random.normal(kw, (N_HEAD * D_K, D_IN), jnp.float32) / math.sqrt(D_IN)
    w_k_t = w_torch.T                                     # (d_in, n_head*d_k)

    pad_mask = jax.random.bernoulli(km, 0.8, (B, T))
    pad_mask = pad_mask.at[:, 0].set(True)                # keep >=1 valid step per row

    out = cross_attn(v, q, w_k_t, pad_mask, n_head=N_HEAD, d_k=D_K)
    out = jax.block_until_ready(out)

    # Pure-JAX reference (mirrors the PyTorch forward exactly, via explicit k).
    k = (v @ w_k_t).reshape(B, T, N_HEAD, D_K).transpose(0, 2, 1, 3)       # b h t d
    qb = jnp.broadcast_to(q[None], (B, N_HEAD, NQ, D_K))                   # b h nq d
    vh = v.reshape(B, T, N_HEAD, D_V).transpose(0, 2, 1, 3)                # b h t dv
    s = jnp.einsum('bhqd,bhtd->bhqt', qb, k) / math.sqrt(D_K)
    s = jnp.where(pad_mask[:, None, None, :], s, -1e30)
    a = jax.nn.softmax(s, axis=-1)
    ref = jnp.einsum('bhqt,bhtv->bhqv', a, vh).transpose(0, 2, 1, 3).reshape(B, NQ, D_IN)

    assert out.shape == (B, NQ, D_IN)
    # exact softmax normalization -> only f32 re-association error remains
    assert jnp.allclose(out, ref, atol=1e-4, rtol=1e-4), float(jnp.max(jnp.abs(out - ref)))
    print("KERNEL_OK")
</pallas_src>

<mosaic_0001>
module attributes {stable_mosaic.version = 11 : i64} {
  func.func @_cross_attn_kernel(%arg0: i32, %arg1: memref<4x16x32xf32, #tpu.memory_space<vmem>>, %arg2: memref<32x32xf32, #tpu.memory_space<vmem>>, %arg3: memref<4x1x16xf32, #tpu.memory_space<vmem>>, %arg4: memref<4x1x256xf32, #tpu.memory_space<vmem>>) attributes {dimension_semantics = [#tpu.dimension_semantics<parallel>], iteration_bounds = array<i64: 4>, scalar_prefetch = 0 : i64, scratch_operands = 0 : i64, tpu.core_type = #tpu.core_type<tc>, window_params = [{transform_indices = @transform_0, window_bounds = array<i64: 4, 16, 32>}, {pipeline_mode = #tpu.pipeline_mode<synchronous>, transform_indices = @transform_1, window_bounds = array<i64: 32, 32>}, {transform_indices = @transform_2, window_bounds = array<i64: 4, 1, 16>}, {transform_indices = @transform_3, window_bounds = array<i64: 4, 1, 256>}]} {
    %c0 = arith.constant 0 : index
    %c0_0 = arith.constant 0 : index
    %c0_1 = arith.constant 0 : index
    %0 = vector.load %arg1[%c0, %c0_0, %c0_1] : memref<4x16x32xf32, #tpu.memory_space<vmem>>, vector<4x16x32xf32>
    %1 = vector.shape_cast %0 : vector<4x16x32xf32> to vector<64x32xf32>
    %c0_2 = arith.constant 0 : index
    %c0_3 = arith.constant 0 : index
    %2 = vector.load %arg2[%c0_2, %c0_3] : memref<32x32xf32, #tpu.memory_space<vmem>>, vector<32x32xf32>
    %cst = arith.constant dense<0.000000e+00> : vector<64x32xf32>
    %3 = tpu.matmul %1, %2, %cst {dimension_numbers = #tpu.dot_dimension_numbers<[1], [0], [0], [1], [0, 0, 1, 1], [], []>} : vector<64x32xf32>, vector<32x32xf32>, vector<64x32xf32> -> vector<64x32xf32>
    %4 = vector.shape_cast %3 : vector<64x32xf32> to vector<4x16x32xf32>
    %5 = tpu.transpose %4, [0, 2, 1] : vector<4x16x32xf32> -> vector<4x32x16xf32>
    %c0_4 = arith.constant 0 : index
    %c0_5 = arith.constant 0 : index
    %c0_6 = arith.constant 0 : index
    %6 = vector.load %arg3[%c0_4, %c0_5, %c0_6] : memref<4x1x16xf32, #tpu.memory_space<vmem>>, vector<4x1x16xf32>
    %cst_7 = arith.constant 5.000000e-01 : f32
    %7 = vector.broadcast %cst_7 : f32 to vector<4x1x16xf32>
    %8 = arith.cmpf ogt, %6, %7 : vector<4x1x16xf32>
    %cst_8 = arith.constant 0.000000e+00 : f32
    %cst_9 = arith.constant -1.000000e+30 : f32
    %9 = vector.broadcast %cst_8 : f32 to vector<4x1x16xf32>
    %10 = vector.broadcast %cst_9 : f32 to vector<4x1x16xf32>
    %11 = arith.select %8, %9, %10 : vector<4x1x16xi1>, vector<4x1x16xf32>
    %12 = vector.broadcast %11 : vector<4x1x16xf32> to vector<4x32x16xf32>
    %13 = arith.addf %5, %12 : vector<4x32x16xf32>
    %cst_10 = arith.constant dense<0xFF800000> : vector<4x32xf32>
    %14 = vector.multi_reduction <maximumf>, %13, %cst_10 [2] : vector<4x32x16xf32> to vector<4x32xf32>
    %15 = vector.shape_cast %14 : vector<4x32xf32> to vector<4x32x1xf32>
    %16 = vector.broadcast %15 : vector<4x32x1xf32> to vector<4x32x16xf32>
    %17 = arith.subf %13, %16 : vector<4x32x16xf32>
    %18 = math.exp %17 : vector<4x32x16xf32>
    %cst_11 = arith.constant dense<0.000000e+00> : vector<4x32xf32>
    %19 = vector.multi_reduction <add>, %18, %cst_11 [2] : vector<4x32x16xf32> to vector<4x32xf32>
    %20 = vector.shape_cast %19 : vector<4x32xf32> to vector<4x32x1xf32>
    %21 = vector.broadcast %20 : vector<4x32x1xf32> to vector<4x32x16xf32>
    %22 = arith.divf %18, %21 : vector<4x32x16xf32>
    %23 = vector.extract_strided_slice %22 {offsets = [0, 0, 0], sizes = [4, 8, 16], strides = [1, 1, 1]} : vector<4x32x16xf32> to vector<4x8x16xf32>
    %24 = vector.extract_strided_slice %0 {offsets = [0, 0, 0], sizes = [4, 16, 8], strides = [1, 1, 1]} : vector<4x16x32xf32> to vector<4x16x8xf32>
    "tpu.trace_start"() <{level = 10 : i32, message = "bqt,btv->bqv"}> : () -> ()
    %cst_12 = arith.constant dense<0.000000e+00> : vector<4x8x8xf32>
    %25 = tpu.matmul %23, %24, %cst_12 {dimension_numbers = #tpu.dot_dimension_numbers<[2], [1], [1], [2], [0, 0, 0, 1, 1, 2], [0], [0]>} : vector<4x8x16xf32>, vector<4x16x8xf32>, vector<4x8x8xf32> -> vector<4x8x8xf32>
    "tpu.trace_stop"() : () -> ()
    %26 = vector.extract_strided_slice %22 {offsets = [0, 8, 0], sizes = [4, 8, 16], strides = [1, 1, 1]} : vector<4x32x16xf32> to vector<4x8x16xf32>
    %27 = vector.extract_strided_slice %0 {offsets = [0, 0, 8], sizes = [4, 16, 8], strides = [1, 1, 1]} : vector<4x16x32xf32> to vector<4x16x8xf32>
    "tpu.trace_start"() <{level = 10 : i32, message = "bqt,btv->bqv"}> : () -> ()
    %cst_13 = arith.constant dense<0.000000e+00> : vector<4x8x8xf32>
    %28 = tpu.matmul %26, %27, %cst_13 {dimension_numbers = #tpu.dot_dimension_numbers<[2], [1], [1], [2], [0, 0, 0, 1, 1, 2], [0], [0]>} : vector<4x8x16xf32>, vector<4x16x8xf32>, vector<4x8x8xf32> -> vector<4x8x8xf32>
    "tpu.trace_stop"() : () -> ()
    %29 = vector.extract_strided_slice %22 {offsets = [0, 16, 0], sizes = [4, 8, 16], strides = [1, 1, 1]} : vector<4x32x16xf32> to vector<4x8x16xf32>
    %30 = vector.extract_strided_slice %0 {offsets = [0, 0, 16], sizes = [4, 16, 8], strides = [1, 1, 1]} : vector<4x16x32xf32> to vector<4x16x8xf32>
    "tpu.trace_start"() <{level = 10 : i32, message = "bqt,btv->bqv"}> : () -> ()
    %cst_14 = arith.constant dense<0.000000e+00> : vector<4x8x8xf32>
    %31 = tpu.matmul %29, %30, %cst_14 {dimension_numbers = #tpu.dot_dimension_numbers<[2], [1], [1], [2], [0, 0, 0, 1, 1, 2], [0], [0]>} : vector<4x8x16xf32>, vector<4x16x8xf32>, vector<4x8x8xf32> -> vector<4x8x8xf32>
    "tpu.trace_stop"() : () -> ()
    %32 = vector.extract_strided_slice %22 {offsets = [0, 24, 0], sizes = [4, 8, 16], strides = [1, 1, 1]} : vector<4x32x16xf32> to vector<4x8x16xf32>
    %33 = vector.extract_strided_slice %0 {offsets = [0, 0, 24], sizes = [4, 16, 8], strides = [1, 1, 1]} : vector<4x16x32xf32> to vector<4x16x8xf32>
    "tpu.trace_start"() <{level = 10 : i32, message = "bqt,btv->bqv"}> : () -> ()
    %cst_15 = arith.constant dense<0.000000e+00> : vector<4x8x8xf32>
    %34 = tpu.matmul %32, %33, %cst_15 {dimension_numbers = #tpu.dot_dimension_numbers<[2], [1], [1], [2], [0, 0, 0, 1, 1, 2], [0], [0]>} : vector<4x8x16xf32>, vector<4x16x8xf32>, vector<4x8x8xf32> -> vector<4x8x8xf32>
    "tpu.trace_stop"() : () -> ()
    %35 = tpu.concatenate %25, %28, %31, %34 in 2 : vector<4x8x8xf32>, vector<4x8x8xf32>, vector<4x8x8xf32>, vector<4x8x8xf32> -> vector<4x8x32xf32>
    %36 = vector.extract_strided_slice %35 {offsets = [0, 0, 0], sizes = [4, 1, 32], strides = [1, 1, 1]} : vector<4x8x32xf32> to vector<4x1x32xf32>
    %37 = vector.shape_cast %36 : vector<4x1x32xf32> to vector<4x32xf32>
    %38 = vector.extract_strided_slice %35 {offsets = [0, 1, 0], sizes = [4, 1, 32], strides = [1, 1, 1]} : vector<4x8x32xf32> to vector<4x1x32xf32>
    %39 = vector.shape_cast %38 : vector<4x1x32xf32> to vector<4x32xf32>
    %40 = vector.extract_strided_slice %35 {offsets = [0, 2, 0], sizes = [4, 1, 32], strides = [1, 1, 1]} : vector<4x8x32xf32> to vector<4x1x32xf32>
    %41 = vector.shape_cast %40 : vector<4x1x32xf32> to vector<4x32xf32>
    %42 = vector.extract_strided_slice %35 {offsets = [0, 3, 0], sizes = [4, 1, 32], strides = [1, 1, 1]} : vector<4x8x32xf32> to vector<4x1x32xf32>
    %43 = vector.shape_cast %42 : vector<4x1x32xf32> to vector<4x32xf32>
    %44 = vector.extract_strided_slice %35 {offsets = [0, 4, 0], sizes = [4, 1, 32], strides = [1, 1, 1]} : vector<4x8x32xf32> to vector<4x1x32xf32>
    %45 = vector.shape_cast %44 : vector<4x1x32xf32> to vector<4x32xf32>
    %46 = vector.extract_strided_slice %35 {offsets = [0, 5, 0], sizes = [4, 1, 32], strides = [1, 1, 1]} : vector<4x8x32xf32> to vector<4x1x32xf32>
    %47 = vector.shape_cast %46 : vector<4x1x32xf32> to vector<4x32xf32>
    %48 = vector.extract_strided_slice %35 {offsets = [0, 6, 0], sizes = [4, 1, 32], strides = [1, 1, 1]} : vector<4x8x32xf32> to vector<4x1x32xf32>
    %49 = vector.shape_cast %48 : vector<4x1x32xf32> to vector<4x32xf32>
    %50 = vector.extract_strided_slice %35 {offsets = [0, 7, 0], sizes = [4, 1, 32], strides = [1, 1, 1]} : vector<4x8x32xf32> to vector<4x1x32xf32>
    %51 = vector.shape_cast %50 : vector<4x1x32xf32> to vector<4x32xf32>
    %52 = tpu.concatenate %37, %39, %41, %43, %45, %47, %49, %51 in 1 : vector<4x32xf32>, vector<4x32xf32>, vector<4x32xf32>, vector<4x32xf32>, vector<4x32xf32>, vector<4x32xf32>, vector<4x32xf32>, vector<4x32xf32> -> vector<4x256xf32>
    %c0_16 = arith.constant 0 : index
    %c0_17 = arith.constant 0 : index
    %c0_18 = arith.constant 0 : index
    %53 = vector.load %arg4[%c0_16, %c0_17, %c0_18] : memref<4x1x256xf32, #tpu.memory_space<vmem>>, vector<4x1x256xf32>
    %54 = vector.shape_cast %53 : vector<4x1x256xf32> to vector<4x256xf32>
    %55 = vector.shape_cast %52 : vector<4x256xf32> to vector<4x1x256xf32>
    tpu.vector_store %arg4[%c0_16, %c0_17, %c0_18], %55 {strides = array<i32>} : memref<4x1x256xf32, #tpu.memory_space<vmem>>, vector<4x1x256xf32>,
    return
  }
  func.func @transform_0(%arg0: i32) -> (i32, i32, i32) {
    %c0_i32 = arith.constant 0 : i32
    %c0_i32_0 = arith.constant 0 : i32
    %c0_i32_1 = arith.constant 0 : i32
    return %arg0, %c0_i32, %c0_i32_0 : i32, i32, i32
  }
  func.func @transform_1(%arg0: i32) -> (i32, i32) {
    %c0_i32 = arith.constant 0 : i32
    %c0_i32_0 = arith.constant 0 : i32
    %c0_i32_1 = arith.constant 0 : i32
    return %c0_i32, %c0_i32_0 : i32, i32
  }
  func.func @transform_2(%arg0: i32) -> (i32, i32, i32) {
    %c0_i32 = arith.constant 0 : i32
    %c0_i32_0 = arith.constant 0 : i32
    %c0_i32_1 = arith.constant 0 : i32
    return %arg0, %c0_i32, %c0_i32_0 : i32, i32, i32
  }
  func.func @transform_3(%arg0: i32) -> (i32, i32, i32) {
    %c0_i32 = arith.constant 0 : i32
    %c0_i32_0 = arith.constant 0 : i32
    %c0_i32_1 = arith.constant 0 : i32
    return %arg0, %c0_i32, %c0_i32_0 : i32, i32, i32
  }
}

</mosaic_0001>

<bundles_post_ra>
// kernel: tpu_custom_call.1
= control target key start
LH: loop header
LB: loop body
LE: loop exit
PB: predicated region body
PF: predicated region fallthrough
CT: control target
= control target key end

     0   :  { %8 = vsyncpa [#allocation3], 0  ;;  %s3648_s0 = inlined_call_operand.hbm [shape: f32[16,16,32], index: 0, kind: input, shape index: {}]   ;;  %s3649_s1 = inlined_call_operand.hbm [shape: f32[32,32], index: 1, kind: input, shape index: {}]   ;;  %s3650_s2 = inlined_call_operand.hbm [shape: f32[16,1,16], index: 2, kind: input, shape index: {}]   ;;  %s3651_s3 = inlined_call_operand.hbm [shape: f32[16,1,256], index: 3, kind: output, shape index: {}]  }
   0x1   :  { %10 = vsyncpa [#allocation3 + $0x1], 0 }
   0x2   :  { %11 = vsyncpa [#allocation6], 0 }
   0x3   :  { %12 = vsyncpa [#allocation4], 0 }
   0x4   :  { %14 = vsyncpa [#allocation4 + $0x1], 0  ;;  %s3001_s12 = smov 0   ;;  %s3003_s13 = smov 0  }
   0x5   :  { %s3005_s14 = smov 0   ;;  %s3007_s15 = smov 0  }
   0x6 LB: > { %s3022_s16 = sadd.s32 1, %s2956_s15   ;;  %s27_s17 = sadd.s32 1, %s2952_s14  ;;  %s2956_s15 = sphi %s3007_s15, %s3675_s15   ;;  %s2952_s14 = sphi %s3005_s14, %s3674_s14   ;;  %s2948_s13 = sphi %s3003_s13, %s3673_s13   ;;  %s2944_s12 = sphi %s3001_s12, %s3672_s12  }
   0x7   : > { %s24_s18 = ssub.s32 %s2956_s15, %s3022_s16  ;;  %p34_p0 = scmp.ne.s32.totalorder %s2952_s14, %s2948_s13 }
   0x8   : > { %p25_p1 = scmp.eq.s32.totalorder %s24_s18, 0  ;;  %p35_p2 = scmp.eq.s32.totalorder %s2956_s15, 0 }
   0x9   : > { %p2615_p4 = scmp.lt.s32.totalorder %s2956_s15, 4  ;;  %s150_s20 = sand.u32 1, %s2956_s15  }
   0xa   : > { %s3031_s19 = scalar_select %p25_p1, %s2952_s14, %s27_s17  }
   0xb   : > { %p36_p3 = por %p35_p2, %p34_p0  ;;  %s152_s21 = sand.u32 1, %s2952_s14  }
   0xc   : > { %s2294_s22 = sshll.u32 %s152_s21, 6  ;;  %s2337_s23 = sshll.u32 %s2956_s15, 10 }
   0xd   : > { %s3043_s26 = scalar_lea.hbm %s3648_s0, %s2337_s23  ;;  %s154_s27 = scalar_lea.vmem [#allocation2], %s2294_s22 }
   0xe   : > { %s162_s28 = sshll.u32 %s154_s27, 4  ;;  %p3045_p5 = pnand %p2615_p4, %p36_p3  ;;  %s3049_s28 = int_to_ptr.vmem [resolvable:$true] %s162_s28 }
   0xf   : > { %s3051_s30 = sshll.u32 %s152_s21, 2  ;;  %s3053_s4 = scalar_lea.sflag [#allocation3], %s150_s20 }
  0x10   : > { %s2794_s5 = scalar_lea.hbm %s3043_s26, 1024  ;;  %p2796_p7 = pneg %p3045_p5 }
  0x11   : > { %p2795_p6 = scmp.ne.s32.totalorder %s3043_s26, %s2794_s5  ;;  %s2799_s8 = scalar_lea.hbm %s3648_s0, 4096 }
  0x12   : > { %p2800_p10 = scmp.lt.u32.totalorder %s3043_s26, %s3648_s0  ;;  %p2801_p11 = scmp.lt.u32.totalorder %s2799_s8, %s2794_s5 }
  0x13   : > { %p2797_p8 = pnand %p2796_p7, %p2795_p6  ;;  %p2803_p13 = scmp.lt.u32.totalorder %s2794_s5, %s3043_s26 }
  0x14   : > { %p2802_p12 = por %p2801_p11, %p2800_p10 }
  0x15   : > { %p2798_p9 = pneg %p2797_p8 }
  0x16   : > { %p2804_p1 = por %p2803_p13, %p2802_p12 }
  0x18   : > { %p2805_p2 = pnand %p2804_p1, %p2798_p9 }
  0x1a   : > { %2808 = shalt.err (!%p2805_p2)
}
  0x1b   : > { %s2809_s11 = scalar_lea.vmem %s3049_s28, 1024  ;;  %s2958_s17 = smov [#allocation2]  }
  0x1c   : > { %p2810_p3 = scmp.ne.s32.totalorder %s3049_s28, %s2809_s11  ;;  %s2814_s18 = sshll.u32 %s2958_s17, 4  ;;  %s2815_s18 = int_to_ptr.vmem [resolvable:$false] %s2814_s18 }
  0x1d   : > { %s2816_s20 = scalar_lea.vmem %s2815_s18, 2048  ;;  %p2817_p8 = scmp.lt.s32.totalorder %s3049_s28, %s2815_s18 }
  0x1e   : > { %p2812_p4 = pnand %p2810_p3, %p2796_p7  ;;  %p2818_p10 = scmp.lt.s32.totalorder %s2816_s20, %s2809_s11 }
  0x20   : > { %p2813_p6 = pneg %p2812_p4  ;;  %p2819_p11 = por %p2818_p10, %p2817_p8 }
  0x22   : > { %p2820_p12 = pnand %p2819_p11, %p2813_p6 }
  0x24   : > { %2823 = shalt.err (!%p2820_p12)
}
  0x25   : > { %s3656_s21 = smov 128   ;;  %s3657_s22 = smov 8  }
  0x26   : > { %2606 = dma.hbm_to_vmem [thread:$0]  (!%p3045_p5), %s3043_s26, 1024, %s3049_s28, %s3053_s4, %s3656_s21, %s3656_s21, %s3657_s22  }
  0x27   : > { %s176_s23 = scalar_lea.vmem [#allocation7], %s3051_s30  ;;  %s3086_s25 = sadd.s32 4294967295, %s2956_s15  }
  0x28   : > { %s183_s24 = sshll.u32 %s176_s23, 4  ;;  %s2290_s27 = sadd.s32 4294967294, %s2956_s15   ;;  %s3126_s24 = int_to_ptr.vmem [resolvable:$true] %s183_s24 }
  0x29   : > { %p40_p9 = scmp.ne.s32.totalorder %s2948_s13, %s2944_s12  ;;  %p3652_p13 = scmp.eq.s32.totalorder %s3086_s25, 0 }
  0x2a   : > { %p111_p1 = scmp.eq.s32.totalorder %s3086_s25, 3  ;;  %p117_p2 = scmp.eq.s32.totalorder %s2290_s27, 3 }
  0x2b   : > { %p2291_p3 = scmp.ge.s32.totalorder %s2956_s15, 1  ;;  %p3096_p4 = por %p3652_p13, %p40_p9 }
  0x2c   : > { %p3103_p6 = por %p111_p1, %p34_p0  ;;  %p3107_p8 = por %p117_p2, %p40_p9 }
  0x2d   : > { %s3659_s5 = scalar_select %p3096_p4, 1, 0 }
  0x2e   : > { %s3660_s26 = scalar_select %p3103_p6, 1, 0 }
  0x2f   : > { %s3661_s28 = scalar_select %p3107_p8, 1, 0 }
  0x30   : > { %p124_p10 = scmp.lt.s32.totalorder %s2956_s15, 5  ;;  %s2961_s6 = smov [#allocation5]  }
  0x31   : > { %s136_s7 = sshll.u32 %s2961_s6, 4  ;;  %s2338_s8 = sshll.u32 %s2956_s15, 6  ;;  %s3116_s7 = int_to_ptr.vmem [resolvable:$true] %s136_s7 }
  0x32   : > { %p3112_p11 = pnand %p2291_p3, %p124_p10  ;;  %s3124_s11 = scalar_lea.hbm %s3650_s2, %s2338_s8 }
  0x33   : > { %s2824_s18 = scalar_lea.hbm %s3124_s11, 64  ;;  %s2829_s27 = scalar_lea.hbm %s3650_s2, 256 }
  0x34   : > { %s3662_s30 = scalar_select %p3112_p11, 1, 0 }
  0x35   : > { %p2599_p0 = pneg %p3112_p11  ;;  %p2825_p9 = scmp.ne.s32.totalorder %s3124_s11, %s2824_s18 }
  0x36   : > { %p2830_p3 = scmp.lt.u32.totalorder %s3124_s11, %s3650_s2  ;;  %p2831_p10 = scmp.lt.u32.totalorder %s2829_s27, %s2824_s18 }
  0x37   : > { %p3130_p12 = pnand %p2599_p0, %p3652_p13  ;;  %p2827_p1 = pnand %p2825_p9, %p2796_p7 }
  0x38   : > { %p2832_p8 = por %p2831_p10, %p2830_p3  ;;  %p2833_p0 = scmp.lt.u32.totalorder %s2824_s18, %s3124_s11 }
  0x39   : > { %p2828_p2 = pneg %p2827_p1 }
  0x3a   : > { %p2834_p13 = por %p2833_p0, %p2832_p8 }
  0x3c   : > { %p2835_p6 = pnand %p2834_p13, %p2828_p2 }
  0x3e   : > { %2838 = shalt.err (!%p2835_p6)
}
  0x3f   : > { %s2839_s9 = scalar_lea.vmem %s3126_s24, 64  ;;  %s2962_s10 = smov [#allocation7]  }
  0x40   : > { %p2840_p9 = scmp.ne.s32.totalorder %s3126_s24, %s2839_s9  ;;  %s2844_s20 = sshll.u32 %s2962_s10, 4  ;;  %s2845_s20 = int_to_ptr.vmem [resolvable:$false] %s2844_s20 }
  0x41   : > { %s2846_s23 = scalar_lea.vmem %s2845_s20, 128  ;;  %p2847_p11 = scmp.lt.s32.totalorder %s3126_s24, %s2845_s20 }
  0x42   : > { %p2842_p1 = pnand %p2840_p9, %p2796_p7  ;;  %p2848_p3 = scmp.lt.s32.totalorder %s2846_s23, %s2839_s9 }
  0x44   : > { %p2843_p4 = pneg %p2842_p1  ;;  %p2849_p10 = por %p2848_p3, %p2847_p11 }
  0x46   : > { %p2850_p8 = pnand %p2849_p10, %p2843_p4 }
  0x48   : > { %2853 = shalt.err (!%p2850_p8)
}
  0x49   : > { %s2963_s18 = smov 16   ;;  %s2964_s27 = smov 1  }
  0x4a   : > { %2609 = dma.hbm_to_vmem [thread:$0]  (!%p3045_p5), %s3124_s11, 64, %s3126_s24, %s3053_s4, %s2963_s18, %s2963_s18, %s2964_s27  }
  0x4b   : > { %s2854_s10 = scalar_lea.hbm %s3649_s1, 512  ;;  %p2856_p13 = pneg %p3130_p12 }
  0x4c   : > { %p2855_p7 = scmp.ne.s32.totalorder %s3649_s1, %s2854_s10  ;;  %p2861_p11 = scmp.lt.u32.totalorder %s2854_s10, %s3649_s1 }
  0x4e   : > { %p2857_p4 = pnand %p2856_p13, %p2855_p7 }
  0x50   : > { %p2858_p6 = pneg %p2857_p4 }
  0x52   : > { %p2863_p2 = pnand %p2861_p11, %p2858_p6 }
  0x54   : > { %2866 = shalt.err (!%p2863_p2)
}
  0x55   : > { %s2867_s29 = scalar_lea.vmem %s3116_s7, 512  ;;  %p2875_p1 = scmp.lt.s32.totalorder %s3116_s7, %s3116_s7 }
  0x56   : > { %p2868_p5 = scmp.ne.s32.totalorder %s3116_s7, %s2867_s29  ;;  %p2876_p3 = scmp.lt.s32.totalorder %s2867_s29, %s2867_s29 }
  0x58   : > { %p2870_p0 = pnand %p2868_p5, %p2856_p13  ;;  %p2877_p10 = por %p2876_p3, %p2875_p1 }
  0x5a   : > { %p2871_p9 = pneg %p2870_p0 }
  0x5c   : > { %p2878_p8 = pnand %p2877_p10, %p2871_p9 }
  0x5e   : > { %2881 = shalt.err (!%p2878_p8)
}
  0x5f   : > { %s3664_s4 = smov 8   ;;  %s3665_s21 = smov 128  }
  0x60   : > { %2602 = dma.hbm_to_vmem [thread:$0]  (!%p3130_p12), %s3649_s1, 512, %s3116_s7, [#allocation6], %s3665_s21, %s3665_s21, %s3664_s4  }
  0x61   : > { %p3666_p7 = scmp.ne.s32.totalorder %s3662_s30, 0 }
  0x62   : > { %s197_s11 = sand.u32 (!%p3666_p7), 1, %s3086_s25   ;;  %s3186_s23 = sand.u32 (!%p3666_p7), 1, %s2948_s13  }
  0x63   : > { %195 = sbr.rel (%p3666_p7) target bundleno = 1344 (0x540), region = 32  ;;  %s2302_s18 = sshll.u32 (!%p3666_p7), %s3186_s23, 6 }
  0x64   : > { %s198_s17 = scalar_lea.sflag (!%p3666_p7), [#allocation3], %s197_s11  ;;  %s201_s27 = scalar_lea.vmem (!%p3666_p7), [#allocation2], %s2302_s18 }
  0x65   : > { %p3667_p13 = scmp.ne.s32.totalorder (!%p3666_p7), %s3659_s5, 0 }
  0x6a   : > { %2927 = dma.done.wait (%p3667_p13), %s198_s17, 1024  }
  0x6b   : > { %2929 = vsyncadd (%p3667_p13), %s198_s17, 4294966272  ;;  %p3668_p12 = scmp.eq.s32.totalorder %s3086_s25, 0 }
  0x6d   : > { %2931 = dma.done.wait (%p3668_p12), [#allocation6], 512   ;;  %p3669_p4 = pmov %p3668_p12 }
  0x6e   : > { %s2304_s30 = sshll.u32 %s3186_s23, 2 }
  0x6f   : > { %2933 = vsyncadd (%p3669_p4), [#allocation6], 4294966784  ;;  %s3198_s7 = scalar_lea.vmem [#allocation7], %s2304_s30 }
  0x70   : > { %2935 = dma.done.wait (%p3667_p13), %s198_s17, 64  }
  0x71   : > { %2937 = vsyncadd (%p3667_p13), %s198_s17, 4294967232  ;;  %vm257_vm0 = vcmask 261120   ;;  %v253_v0 = vld [vmem:[#allocation5] sm:$0xff]  ;;  %v254_v1 = vld [vmem:[#allocation5 + $0x8] sm:$0xff]  ;;  %s2965_s5 = smov 120   ;;  %s2966_s6 = smov 112   ;;  %v531_v32 = vlaneseq }
  0x72   : > { %v255_v2 = vld [vmem:[#allocation5 + $0x10] sm:$0xff]  ;;  %v2533_v3 = vpack.c.bf16 %v254_v1, %v253_v0  ;;  %v256_v4 = vld [vmem:[#allocation5 + $0x18] sm:$0xff]  ;;  %v3204_v5 = vld [vmem:[%s201_s27] sm:$0xff]  ;;  %v2967_v18 = vmov 0.0|0.0   ;;  %v2968_v40 = vmov -1e+30  }
  0x73   : > { %v3206_v6 = vld [vmem:[%s201_s27 + $0x8] sm:$0xff]  ;;  %v2537_v7 = vpack.c.bf16 %v256_v4, %v255_v2  ;;  %2409 = vmatprep.mubr.msk.f32.mxu0 %vm257_vm0, %v3204_v5  ;;  %v3210_v8 = vld [vmem:[%s201_s27 + $0x10] sm:$0xff]  ;;  %v3212_v9 = vld [vmem:[%s201_s27 + $0x18] sm:$0xff]  ;;  %2541 = vmatprep.subr.bf16.mxu1 %v2967_v18  ;;  %v3271_v35 = vshrl.u32 %v531_v32, 7  ;;  %vm567_vm3 = vcmask 130048   ;;  %s2969_s8 = smov 104  }
  0x74   : > { %v3216_v10 = vpack.i.bf16 %v3206_v6, %v3204_v5  ;;  %2534 = vmatprep.subr.bf16.mxu0 %v2533_v3  ;;  %v3218_v11 = vld [vmem:[%s201_s27 + $0x30] sm:$0xff]  ;;  %v3220_v12 = vld [vmem:[%s201_s27 + $0x38] sm:$0xff]  ;;  %v3224_v13 = vpack.i.bf16 %v3212_v9, %v3210_v8  ;;  %v3226_v14 = vld [vmem:[%s201_s27 + $0x20] sm:$0xff]  ;;  %vm2970_vm6 = vmmov 0   ;;  %s2972_s10 = smov 8   ;;  %s2973_s9 = smov 16  }
  0x75   : > { %2536 = vmatpush3.bf16.msra.mxu0 %v2533_v3  ;;  %v3228_v15 = vld [vmem:[%s201_s27 + $0x28] sm:$0xff]  ;;  %v3233_v16 = vpack.i.bf16 %v3220_v12, %v3218_v11  ;;  %v515_v34 = vld [vmem:[%s3198_s7] sm:$0x1]  ;;  %v516_v37 = vld [vmem:[%s3198_s7 + $0x1] sm:$0x1]  ;;  %v533_v38 = vsub.s32 0, %v3271_v35 }
  0x76   : > { %2671 = vrot.lane.b32.xlu0 %v3216_v10, %s2965_s5  ;;  %2538 = vmatprep.subr.bf16.mxu0 %v2537_v7  ;;  %v3238_v17 = vpack.i.bf16 %v3228_v15, %v3226_v14  ;;  %vm519_vm1 = vcmp.gt.f32.partialorder %v515_v34, 0.5  ;;  %vm520_vm2 = vcmp.gt.f32.partialorder %v516_v37, 0.5  ;;  %v517_v52 = vld [vmem:[%s3198_s7 + $0x2] sm:$0x1]  ;;  %v518_v59 = vld [vmem:[%s3198_s7 + $0x3] sm:$0x1] }
  0x77   : > { %2676 = vrot.lane.b32.xlu1 %v3224_v13, %s2965_s5  ;;  %v523_v41 = vsel %vm519_vm1, 0.0, %v2968_v40  ;;  %v524_v44 = vsel %vm520_vm2, 0.0, %v2968_v40  ;;  %vm521_vm4 = vcmp.gt.f32.partialorder %v517_v52, 0.5  ;;  %vm522_vm5 = vcmp.gt.f32.partialorder %v518_v59, 0.5  ;;  %s2974_s20 = smov 24   ;;  %s2975_s29 = smov 64  }
  0x78   : > { %v534_v43 = vrot.slane %v523_v41, %v533_v38  ;;  %v538_v48 = vrot.slane %v524_v44, %v533_v38  ;;  %v525_v61 = vsel %vm521_vm4, 0.0, %v2968_v40  ;;  %v526_v2 = vsel %vm522_vm5, 0.0, %v2968_v40  ;;  %s2976_s4 = smov 32   ;;  %s2977_s21 = smov 96  }
  0x79   : > { %2540 = vmatpush3.bf16.msra.mxu0 %v2537_v7  ;;  %v542_v1 = vrot.slane %v525_v61, %v533_v38  ;;  %vm2032_vm7 = vcmask 64512   ;;  %vm2041_vm8 = vcmask 195584   ;;  %vm2051_vm9 = vcmask 1041409   ;;  %s2305_s22 = sshll.u32 %s3186_s23, 3  ;;  %s2340_s24 = sshll.u32 %s3086_s25, 7 }
  0x7a   : > { %2686 = vrot.lane.b32.xlu0 %v3233_v16, %s2965_s5  ;;  %2556 = vmatprep.subr.bf16.mxu0 %v2967_v18  ;;  %vm2054_vm10 = vcmask 1042434   ;;  %vm2057_vm11 = vcmask 1043459   ;;  %vm2126_vm12 = vcmask 523264   ;;  %vm2128_vm13 = vcmask 785408   ;;  %s241_s11 = scalar_lea.vmem [#allocation8], %s2305_s22  ;;  %s3601_s30 = scalar_lea.hbm %s3651_s3, %s2340_s24 }
  0x7b   : > { %2681 = vrot.lane.b32.xlu1 %v3238_v17, %s2965_s5  ;;  %vm2166_vm14 = vcmp.lt.s32.totalorder %v531_v32, 256  ;;  %s2187_s18 = sshll.u32 %s241_s11, 4  ;;  %s2173_s25 = scalar_lea.sflag [#allocation4], %s3186_s23  ;;  %s3603_s18 = int_to_ptr.vmem [resolvable:$true] %s2187_s18 }
  0x7c   : > { %2410 = vmatmul.mubr.msk.f32.vlgmr.msra.gmra.mrb[0].mxu0 %vm257_vm0, %v3206_v6  ;;  %s2882_s7 = scalar_lea.vmem %s3603_s18, 128  ;;  %p3670_p11 = scmp.ne.s32.totalorder %s3660_s26, 0 }
  0x7d   : > { %2412 = vmatprep.mubr.msk.f32.mxu0 %vm257_vm0, %v3210_v8  ;;  %p2883_p6 = scmp.ne.s32.totalorder %s3603_s18, %s2882_s7  ;;  %s2979_s5 = smov [#allocation8]  }
  0x7e   : > { %2696 = vrot.lane.b32.xlu0 %v3224_v13, %s2966_s6 }
  0x7f   : > { %2691 = vrot.lane.b32.xlu1 %v3216_v10, %s2966_s6  ;;  %p2884_p2 = pnand %p2883_p6, %p3670_p11 }
  0x80   : > { %2413 = vmatmul.mubr.msk.f32.gmra.mrb[2].mxu0 %vm257_vm0, %v3212_v9 }
  0x81   : > { %2415 = vmatprep.mubr.msk.f32.mxu0 %vm257_vm0, %v3226_v14  ;;  %p2885_p5 = pneg %p2884_p2 }
  0x83   : > { %2701 = vrot.lane.b32.xlu1 %v3238_v17, %s2966_s6 }
  0x84   : > { %2416 = vmatmul.mubr.msk.f32.gmra.mrb[4].mxu0 %vm257_vm0, %v3228_v15 }
  0x85   : > { %2418 = vmatprep.mubr.msk.f32.mxu0 %vm257_vm0, %v3218_v11 }
  0x88   : > { %2419 = vmatmul.mubr.msk.f32.gmra.mrb[6].mxu0 %vm257_vm0, %v3220_v12 }
  0xe8   : > { %v3265_v31 = vpop.permute.xlu0 %2671 }
  0xe9   : > { %v2677_v19 = vpop.permute.xlu1 %2676 }
  0xea   : > { %v2679_v20 = vunpack.i.h.bf16 %v2677_v19  ;;  %v2678_v21 = vunpack.i.l.bf16 %v2677_v19 }
  0xec   : > { %v2557_v22 = vpack.c.bf16 %v2679_v20, %v2678_v21  ;;  %v3273_v36 = vpop.permute.xlu0 %2686  ;;  %v546_v20 = vrot.slane %v526_v2, %v533_v38 }
  0xed   : > { %v3267_v33 = vpop.permute.xlu1 %2681 }
  0xee   : > { %2558 = vmatpush3.bf16.msra.mxu0 %v2557_v22 }
  0xef   : > { %2562 = vmatprep.subr.bf16.mxu0 %v2967_v18 }
  0xf0   : > { %v3279_v42 = vpop.permute.xlu0 %2696 }
  0xf1   : > { %v3277_v39 = vpop.permute.xlu1 %2691 }
  0xf5   : > { %v3281_v45 = vpop.permute.xlu1 %2701 }
 0x14f   : > { %v2411_v23 = vpop.f32.mrb[0].mxu0 }
 0x150   : > { %v348_v24 = vpop.f32.mrb[1].mxu0 }
 0x151   : > { %387 = vxpose.xlu0.b32.start [1/2] (short) (narrow) %v348_v24, 32 }
 0x153   : > { %v2414_v25 = vpop.f32.mrb[2].mxu0 }
 0x154   : > { %v358_v26 = vpop.f32.mrb[3].mxu0 }
 0x155   : > { %388 = vxpose.xlu0.b32.end [2/2] (short) (narrow) %v2411_v23, 32  ;;  %419 = vxpose.xlu1.b32.start [1/2] (short) (narrow) %v358_v26, 32 }
 0x157   : > { %v2417_v27 = vpop.f32.mrb[4].mxu0 }
 0x158   : > { %v368_v28 = vpop.f32.mrb[5].mxu0 }
 0x159   : > { %420 = vxpose.xlu1.b32.end [2/2] (short) (narrow) %v2414_v25, 32 }
 0x15b   : > { %v2420_v29 = vpop.f32.mrb[6].mxu0 }
 0x15c   : > { %v378_v30 = vpop.f32.mrb[7].mxu0 }
 0x15e   : > { %451 = vxpose.xlu0.b32.start [1/2] (short) (narrow) %v368_v28, 32 }
 0x162   : > { %452 = vxpose.xlu0.b32.end [2/2] (short) (narrow) %v2417_v27, 32  ;;  %483 = vxpose.xlu1.b32.start [1/2] (short) (narrow) %v378_v30, 32 }
 0x166   : > { %484 = vxpose.xlu1.b32.end [2/2] (short) (narrow) %v2420_v29, 32 }
 0x1d1   : > { %v403_v46 = vpop.trf.xlu0 }
 0x1d2   : > { %v3283_v47 = vadd.f32 %v534_v43, %v403_v46 }
 0x1d4   : > { %v568_v49 = vsel %vm567_vm3, %v3283_v47, -inf }
 0x1d5   : > { %v404_v50 = vpop.trf.xlu0  ;;  %v435_v51 = vpop.trf.xlu1  ;;  %569 = vmax.xlane.f32.xlu0 %v568_v49 }
 0x1d6   : > { %v3288_v53 = vadd.f32 %v534_v43, %v404_v50  ;;  %v3290_v54 = vadd.f32 %v538_v48, %v435_v51 }
 0x1d8   : > { %v571_v55 = vsel %vm567_vm3, %v3288_v53, -inf  ;;  %v580_v56 = vsel %vm567_vm3, %v3290_v54, -inf }
 0x1d9   : > { %v405_v57 = vpop.trf.xlu0  ;;  %572 = vmax.xlane.f32.xlu0 %v571_v55  ;;  %581 = vmax.xlane.f32.xlu1 %v580_v56  ;;  %v436_v58 = vpop.trf.xlu1 }
 0x1da   : > { %v3297_v60 = vadd.f32 %v534_v43, %v405_v57  ;;  %v3301_v7 = vadd.f32 %v538_v48, %v436_v58 }
 0x1dc   : > { %v574_v62 = vsel %vm567_vm3, %v3297_v60, -inf  ;;  %v583_v25 = vsel %vm567_vm3, %v3301_v7, -inf }
 0x1dd   : > { %v406_v63 = vpop.trf.xlu0  ;;  %575 = vmax.xlane.f32.xlu0 %v574_v62  ;;  %v437_v0 = vpop.trf.xlu1 }
 0x1de   : > { %v3313_v27 = vadd.f32 %v534_v43, %v406_v63  ;;  %v3317_v30 = vadd.f32 %v538_v48, %v437_v0 }
 0x1e0   : > { %v577_v40 = vsel %vm567_vm3, %v3313_v27, -inf  ;;  %v586_v43 = vsel %vm567_vm3, %v3317_v30, -inf }
 0x1e1   : > { %v467_v3 = vpop.trf.xlu0  ;;  %v438_v4 = vpop.trf.xlu1 }
 0x1e2   : > { %v3303_v19 = vadd.f32 %v542_v1, %v467_v3  ;;  %v3331_v49 = vadd.f32 %v538_v48, %v438_v4 }
 0x1e4   : > { %v592_v21 = vsel %vm567_vm3, %v3303_v19, -inf  ;;  %v589_v51 = vsel %vm567_vm3, %v3331_v49, -inf }
 0x1e5   : > { %v468_v22 = vpop.trf.xlu0  ;;  %593 = vmax.xlane.f32.xlu1 %v592_v21  ;;  %v499_v23 = vpop.trf.xlu1 }
 0x1e6   : > { %v3307_v24 = vadd.f32 %v542_v1, %v468_v22  ;;  %v3311_v26 = vadd.f32 %v546_v20, %v499_v23 }
 0x1e8   : > { %v595_v28 = vsel %vm567_vm3, %v3307_v24, -inf  ;;  %v604_v37 = vsel %vm567_vm3, %v3311_v26, -inf }
 0x1e9   : > { %596 = vmax.xlane.f32.xlu0 %v595_v28  ;;  %584 = vmax.xlane.f32.xlu1 %v583_v25  ;;  %v469_v29 = vpop.trf.xlu0  ;;  %v500_v38 = vpop.trf.xlu1 }
 0x1ea   : > { %v3319_v34 = vadd.f32 %v542_v1, %v469_v29  ;;  %v3329_v44 = vadd.f32 %v546_v20, %v500_v38 }
 0x1ec   : > { %v598_v41 = vsel %vm567_vm3, %v3319_v34, -inf  ;;  %v607_v50 = vsel %vm567_vm3, %v3329_v44, -inf }
 0x1ed   : > { %578 = vmax.xlane.f32.xlu0 %v577_v40  ;;  %605 = vmax.xlane.f32.xlu1 %v604_v37  ;;  %v501_v46 = vpop.trf.xlu1  ;;  %v470_v58 = vpop.trf.xlu0 }
 0x1ee   : > { %v3337_v52 = vadd.f32 %v546_v20, %v501_v46  ;;  %v3349_v59 = vadd.f32 %v542_v1, %v470_v58 }
 0x1f0   : > { %v610_v56 = vsel %vm567_vm3, %v3337_v52, -inf  ;;  %v601_v61 = vsel %vm567_vm3, %v3349_v59, -inf }
 0x1f1   : > { %599 = vmax.xlane.f32.xlu0 %v598_v41  ;;  %587 = vmax.xlane.f32.xlu1 %v586_v43  ;;  %v502_v55 = vpop.trf.xlu1 }
 0x1f2   : > { %v3341_v57 = vadd.f32 %v546_v20, %v502_v55 }
 0x1f4   : > { %v613_v48 = vsel %vm567_vm3, %v3341_v57, -inf }
 0x1f5   : > { %608 = vmax.xlane.f32.xlu1 %v607_v50 }
 0x1f9   : > { %590 = vmax.xlane.f32.xlu1 %v589_v51 }
 0x1fd   : > { %611 = vmax.xlane.f32.xlu1 %v610_v56 }
 0x201   : > { %614 = vmax.xlane.f32.xlu1 %v613_v48 }
 0x207   : > { %2706 = vrot.lane.b32.xlu0 %v3233_v16, %s2966_s6  ;;  %s2886_s6 = sshll.u32 %s2979_s5, 4  ;;  %s2887_s6 = int_to_ptr.vmem [resolvable:$false] %s2886_s6 }
 0x208   : > { %p2889_p0 = scmp.lt.s32.totalorder %s3603_s18, %s2887_s6 }
 0x212   : > { %2711 = vrot.lane.b32.xlu1 %v3216_v10, %s2969_s8 }
 0x226   : > { %602 = vmax.xlane.f32.xlu0 %v601_v61 }
 0x23c   : > { %2716 = vrot.lane.b32.xlu0 %v3224_v13, %s2969_s8 }
 0x262   : > { %v570_v62 = vpop.xlane.xlu0 %569 }
 0x263   : > { %v616_v63 = vsub.f32 %v3283_v47, %v570_v62 }
 0x265   : > { %v632_v0 = vmul.f32 1.442695, %v616_v63 }
 0x266   : > { %v573_v2 = vpop.xlane.xlu0 %572  ;;  %v582_v3 = vpop.xlane.xlu1 %581 }
 0x267   : > { %2730 = vpow2.f32 %v632_v0  ;;  %v617_v4 = vsub.f32 %v3288_v53, %v573_v2  ;;  %v620_v10 = vsub.f32 %v3290_v54, %v582_v3 }
 0x269   : > { %v634_v1 = vmul.f32 1.442695, %v617_v4  ;;  %v640_v20 = vmul.f32 1.442695, %v620_v10 }
 0x26a   : > { %v576_v21 = vpop.xlane.xlu0 %575 }
 0x26b   : > { %2732 = vpow2.f32 %v634_v1  ;;  %v618_v13 = vsub.f32 %v3297_v60, %v576_v21 }
 0x26c   : > { %2734 = vpow2.f32 %v640_v20 }
 0x26d   : > { %v636_v53 = vmul.f32 1.442695, %v618_v13 }
 0x271   : > { %v3358_v22 = vpop.eup %2730 }
 0x272   : > { %v594_v23 = vpop.xlane.xlu1 %593  ;;  %v664_v47 = vsel %vm567_vm3, %v3358_v22, 0.0 }
 0x273   : > { %v624_v25 = vsub.f32 %v3303_v19, %v594_v23  ;;  %665 = vadd.xlane.f32.xlu0 %v664_v47 }
 0x275   : > { %v3364_v28 = vpop.eup %2732  ;;  %v648_v54 = vmul.f32 1.442695, %v624_v25 }
 0x276   : > { %v3366_v29 = vpop.eup %2734  ;;  %v597_v37 = vpop.xlane.xlu0 %596  ;;  %v667_v40 = vsel %vm567_vm3, %v3364_v28, 0.0 }
 0x277   : > { %v585_v38 = vpop.xlane.xlu1 %584  ;;  %2736 = vpow2.f32 %v648_v54  ;;  %v625_v60 = vsub.f32 %v3307_v24, %v597_v37  ;;  %668 = vadd.xlane.f32.xlu0 %v667_v40  ;;  %v676_v19 = vsel %vm567_vm3, %v3366_v29, 0.0 }
 0x278   : > { %v621_v41 = vsub.f32 %v3301_v7, %v585_v38  ;;  %677 = vadd.xlane.f32.xlu1 %v676_v19  ;;  %2738 = vpow2.f32 %v636_v53  ;;  %v2542_v53 = vpack.c.bf16 %v3206_v6, %v3204_v5  ;;  %v2971_v6 = vmov 0.0  }
 0x279   : > { %v650_v43 = vmul.f32 1.442695, %v625_v60  ;;  %2425 = vmatprep.mubr.msk.f32.mxu1 %vm2970_vm6, %v2971_v6  ;;  %2460 = vmatprep.mubr.msk.f32.mxu0 %vm2970_vm6, %v2971_v6 }
 0x27a   : > { %v642_v46 = vmul.f32 1.442695, %v621_v41  ;;  %v579_v50 = vpop.xlane.xlu0 %578  ;;  %2543 = vmatpush3.bf16.msra.mxu1 %v2542_v53 }
 0x27b   : > { %v606_v51 = vpop.xlane.xlu1 %605  ;;  %v619_v55 = vsub.f32 %v3313_v27, %v579_v50  ;;  %2544 = vmatprep.subr.bf16.mxu1 %v2967_v18 }
 0x27c   : > { %v628_v56 = vsub.f32 %v3311_v26, %v606_v51  ;;  %2740 = vpow2.f32 %v642_v46 }
 0x27d   : > { %2742 = vpow2.f32 %v650_v43  ;;  %v638_v48 = vmul.f32 1.442695, %v619_v55 }
 0x27e   : > { %v656_v24 = vmul.f32 1.442695, %v628_v56  ;;  %v600_v58 = vpop.xlane.xlu0 %599 }
 0x27f   : > { %v588_v7 = vpop.xlane.xlu1 %587  ;;  %v626_v61 = vsub.f32 %v3319_v34, %v600_v58 }
 0x280   : > { %v622_v62 = vsub.f32 %v3317_v30, %v588_v7  ;;  %2744 = vpow2.f32 %v656_v24 }
 0x281   : > { %v3378_v63 = vpop.eup %2736  ;;  %2746 = vpow2.f32 %v638_v48  ;;  %v652_v0 = vmul.f32 1.442695, %v626_v61 }
 0x282   : > { %v644_v2 = vmul.f32 1.442695, %v622_v62  ;;  %v688_v26 = vsel %vm567_vm3, %v3378_v63, 0.0  ;;  %v3382_v27 = vpop.eup %2738  ;;  %v3437_v7 = vpop.permute.xlu0 %2706 }
 0x283   : > { %v609_v3 = vpop.xlane.xlu1 %608  ;;  %689 = vadd.xlane.f32.xlu0 %v688_v26  ;;  %v670_v1 = vsel %vm567_vm3, %v3382_v27, 0.0 }
 0x284   : > { %v629_v4 = vsub.f32 %v3329_v44, %v609_v3  ;;  %2748 = vpow2.f32 %v644_v2 }
 0x285   : > { %2750 = vpow2.f32 %v652_v0 }
 0x286   : > { %v658_v34 = vmul.f32 1.442695, %v629_v4  ;;  %v3385_v10 = vpop.eup %2740 }
 0x287   : > { %v591_v30 = vpop.xlane.xlu1 %590  ;;  %v3389_v20 = vpop.eup %2742  ;;  %671 = vadd.xlane.f32.xlu0 %v670_v1  ;;  %v679_v13 = vsel %vm567_vm3, %v3385_v10, 0.0 }
 0x288   : > { %2752 = vpow2.f32 %v658_v34  ;;  %v623_v21 = vsub.f32 %v3331_v49, %v591_v30  ;;  %680 = vadd.xlane.f32.xlu1 %v679_v13  ;;  %v691_v25 = vsel %vm567_vm3, %v3389_v20, 0.0  ;;  %v2545_v30 = vpack.c.bf16 %v3212_v9, %v3210_v8 }
 0x28a   : > { %v646_v44 = vmul.f32 1.442695, %v623_v21  ;;  %v3394_v23 = vpop.eup %2744 }
 0x28b   : > { %v612_v47 = vpop.xlane.xlu1 %611  ;;  %v3400_v54 = vpop.eup %2746  ;;  %692 = vadd.xlane.f32.xlu0 %v691_v25  ;;  %v700_v37 = vsel %vm567_vm3, %v3394_v23, 0.0 }
 0x28c   : > { %2754 = vpow2.f32 %v646_v44  ;;  %v630_v49 = vsub.f32 %v3337_v52, %v612_v47  ;;  %701 = vadd.xlane.f32.xlu1 %v700_v37  ;;  %v673_v5 = vsel %vm567_vm3, %v3400_v54, 0.0  ;;  %v2548_v44 = vpack.c.bf16 %v3228_v15, %v3226_v14 }
 0x28d   : > { %v2551_v14 = vpack.c.bf16 %v3220_v12, %v3218_v11  ;;  %v2688_v37 = vunpack.i.l.bf16 %v3273_v36 }
 0x28e   : > { %v660_v38 = vmul.f32 1.442695, %v630_v49  ;;  %v3406_v40 = vpop.eup %2748  ;;  %v2689_v49 = vunpack.i.h.bf16 %v3273_v36 }
 0x28f   : > { %v615_v60 = vpop.xlane.xlu1 %614  ;;  %v3414_v52 = vpop.eup %2750  ;;  %674 = vadd.xlane.f32.xlu0 %v673_v5  ;;  %v682_v19 = vsel %vm567_vm3, %v3406_v40, 0.0  ;;  %v2673_v5 = vunpack.i.l.bf16 %v3265_v31 }
 0x290   : > { %2756 = vpow2.f32 %v660_v38  ;;  %v631_v41 = vsub.f32 %v3341_v57, %v615_v60  ;;  %683 = vadd.xlane.f32.xlu1 %v682_v19  ;;  %v694_v50 = vsel %vm567_vm3, %v3414_v52, 0.0  ;;  %v2684_v19 = vunpack.i.h.bf16 %v3267_v33 }
 0x292   : > { %v3419_v43 = vpop.eup %2752  ;;  %v662_v46 = vmul.f32 1.442695, %v631_v41  ;;  %v2563_v41 = vpack.c.bf16 %v2689_v49, %v2688_v37 }
 0x293   : > { %v703_v51 = vsel %vm567_vm3, %v3419_v43, 0.0  ;;  %695 = vadd.xlane.f32.xlu0 %v694_v50  ;;  %v3450_v34 = vpop.permute.xlu1 %2711 }
 0x294   : > { %2758 = vpow2.f32 %v662_v46  ;;  %704 = vadd.xlane.f32.xlu1 %v703_v51 }
 0x296   : > { %v3425_v55 = vpop.eup %2754 }
 0x297   : > { %v685_v57 = vsel %vm567_vm3, %v3425_v55, 0.0 }
 0x298   : > { %686 = vadd.xlane.f32.xlu1 %v685_v57 }
 0x29a   : > { %v3429_v56 = vpop.eup %2756 }
 0x29b   : > { %v706_v48 = vsel %vm567_vm3, %v3429_v56, 0.0 }
 0x29c   : > { %707 = vadd.xlane.f32.xlu1 %v706_v48  ;;  %v2699_v48 = vunpack.i.h.bf16 %v3279_v42 }
 0x29e   : > { %v3433_v24 = vpop.eup %2758 }
 0x29f   : > { %v709_v58 = vsel %vm567_vm3, %v3433_v24, 0.0 }
 0x2a0   : > { %710 = vadd.xlane.f32.xlu1 %v709_v58 }
 0x2b1   : > { %2721 = vrot.lane.b32.xlu1 %v3238_v17, %s2969_s8 }
 0x2b3   : > { %v603_v61 = vpop.xlane.xlu0 %602 }
 0x2b4   : > { %v627_v62 = vsub.f32 %v3349_v59, %v603_v61 }
 0x2b6   : > { %v654_v0 = vmul.f32 1.442695, %v627_v62  ;;  %v2698_v62 = vunpack.i.l.bf16 %v3279_v42  ;;  %v2709_v42 = vunpack.i.h.bf16 %v3437_v7 }
 0x2b7   : > { %v3448_v26 = vpop.permute.xlu0 %2716 }
 0x2b8   : > { %2760 = vpow2.f32 %v654_v0  ;;  %v2694_v0 = vunpack.i.h.bf16 %v3277_v39 }
 0x2c2   : > { %v3442_v2 = vpop.eup %2760 }
 0x2c3   : > { %v697_v3 = vsel %vm567_vm3, %v3442_v2, 0.0 }
 0x2c4   : > { %698 = vadd.xlane.f32.xlu0 %v697_v3  ;;  %v2693_v3 = vunpack.i.l.bf16 %v3277_v39 }
 0x2da   : > { %2726 = vrot.lane.b32.xlu0 %v3233_v16, %s2969_s8  ;;  %s2888_s8 = scalar_lea.vmem %s2887_s6, 256 }
 0x2db   : > { %p2890_p9 = scmp.lt.s32.totalorder %s2888_s8, %s2882_s7 }
 0x2dd   : > { %p2891_p1 = por %p2890_p9, %p2889_p0 }
 0x2df   : > { %p2892_p3 = pnand %p2891_p1, %p2885_p5 }
 0x300   : > { %v666_v4 = vpop.xlane.xlu0 %665 }
 0x301   : > { %2762 = vrcp.f32 %v666_v4 }
 0x304   : > { %v669_v1 = vpop.xlane.xlu0 %668 }
 0x305   : > { %v678_v17 = vpop.xlane.xlu1 %677 }
 0x306   : > { %2764 = vrcp.f32 %v678_v17  ;;  %v2704_v17 = vunpack.i.h.bf16 %v3281_v45 }
 0x30b   : > { %v2763_v59 = vpop.eup %2762 }
 0x30c   : > { %v713_v21 = vmul.f32 %v2763_v59, %v3358_v22  ;;  %v2703_v59 = vunpack.i.l.bf16 %v3281_v45  ;;  %v2566_v45 = vpack.c.bf16 %v2694_v0, %v2693_v3 }
 0x30e   : > { %2426 = vmatmul.mubr.msk.f32.vlgmr.msra.gmra.mrb[0].mxu1 %vm567_vm3, %v713_v21 }
 0x30f   : > { %2546 = vmatpush3.bf16.msra.mxu1 %v2545_v30  ;;  %2432 = vmatprep.mubr.msk.f32.mxu1 %vm2970_vm6, %v2971_v6  ;;  %v2708_v30 = vunpack.i.l.bf16 %v3437_v7 }
 0x310   : > { %v2765_v16 = vpop.eup %2764  ;;  %v690_v13 = vpop.xlane.xlu0 %689  ;;  %2547 = vmatprep.subr.bf16.mxu1 %v2967_v18 }
 0x311   : > { %v721_v47 = vmul.f32 %v2765_v16, %v3366_v29  ;;  %2766 = vrcp.f32 %v690_v13  ;;  %v2569_v13 = vpack.c.bf16 %v2699_v48, %v2698_v62 }
 0x313   : > { %2433 = vmatmul.mubr.msk.f32.vlgmr.msra.gmra.mrb[2].mxu1 %vm567_vm3, %v721_v47  ;;  %v2575_v47 = vpack.c.bf16 %v2709_v42, %v2708_v30 }
 0x314   : > { %v672_v8 = vpop.xlane.xlu0 %671  ;;  %2549 = vmatpush3.bf16.msra.mxu1 %v2548_v44  ;;  %2439 = vmatprep.mubr.msk.f32.mxu1 %vm2970_vm6, %v2971_v6  ;;  %v2572_v44 = vpack.c.bf16 %v2704_v17, %v2703_v59 }
 0x315   : > { %v681_v9 = vpop.xlane.xlu1 %680  ;;  %2550 = vmatprep.subr.bf16.mxu1 %v2967_v18 }
 0x316   : > { %2768 = vrcp.f32 %v681_v9  ;;  %v2714_v9 = vunpack.i.h.bf16 %v3450_v34 }
 0x318   : > { %v693_v22 = vpop.xlane.xlu0 %692 }
 0x319   : > { %v702_v25 = vpop.xlane.xlu1 %701 }
 0x31a   : > { %2770 = vrcp.f32 %v702_v25  ;;  %v2719_v25 = vunpack.i.h.bf16 %v3448_v26 }
 0x31b   : > { %v2767_v53 = vpop.eup %2766  ;;  %2772 = vrcp.f32 %v669_v1 }
 0x31c   : > { %v729_v15 = vmul.f32 %v2767_v53, %v3378_v63  ;;  %v675_v38 = vpop.xlane.xlu0 %674  ;;  %2774 = vrcp.f32 %v693_v22  ;;  %v2674_v63 = vunpack.i.h.bf16 %v3265_v31  ;;  %v2713_v22 = vunpack.i.l.bf16 %v3450_v34 }
 0x31d   : > { %v684_v29 = vpop.xlane.xlu1 %683  ;;  %v2718_v53 = vunpack.i.l.bf16 %v3448_v26 }
 0x31e   : > { %2440 = vmatmul.mubr.msk.f32.vlgmr.msra.gmra.mrb[4].mxu1 %vm567_vm3, %v729_v15  ;;  %v2554_v57 = vpack.c.bf16 %v2674_v63, %v2673_v5  ;;  %v2578_v49 = vpack.c.bf16 %v2714_v9, %v2713_v22 }
 0x31f   : > { %2552 = vmatpush3.bf16.msra.mxu1 %v2551_v14  ;;  %2446 = vmatprep.mubr.msk.f32.mxu1 %vm2970_vm6, %v2971_v6  ;;  %v2581_v37 = vpack.c.bf16 %v2719_v25, %v2718_v53 }
 0x320   : > { %v2769_v60 = vpop.eup %2768  ;;  %2553 = vmatprep.subr.bf16.mxu1 %v2967_v18  ;;  %v696_v50 = vpop.xlane.xlu0 %695 }
 0x321   : > { %v723_v11 = vmul.f32 %v2769_v60, %v3385_v10  ;;  %v705_v12 = vpop.xlane.xlu1 %704  ;;  %v2683_v10 = vunpack.i.l.bf16 %v3267_v33 }
 0x322   : > { %2776 = vrcp.f32 %v705_v12 }
 0x323   : > { %2778 = vrcp.f32 %v672_v8  ;;  %2461 = vmatmul.mubr.msk.f32.vlgmr.msra.gmra.mrb[8].mxu0 %vm567_vm3, %v723_v11  ;;  %v2560_v58 = vpack.c.bf16 %v2684_v19, %v2683_v10 }
 0x324   : > { %v2771_v36 = vpop.eup %2770  ;;  %2780 = vrcp.f32 %v684_v29  ;;  %2564 = vmatpush3.bf16.msra.mxu0 %v2563_v41  ;;  %2474 = vmatprep.mubr.msk.f32.mxu0 %vm2970_vm6, %v2971_v6 }
 0x325   : > { %v737_v46 = vmul.f32 %v2771_v36, %v3394_v23  ;;  %v687_v51 = vpop.xlane.xlu1 %686  ;;  %2568 = vmatprep.subr.bf16.mxu0 %v2967_v18  ;;  %v2773_v31 = vpop.eup %2772  ;;  %2782 = vrcp.f32 %v696_v50 }
 0x326   : > { %v715_v33 = vmul.f32 %v2773_v31, %v3364_v28  ;;  %v2775_v23 = vpop.eup %2774 }
 0x327   : > { %2447 = vmatmul.mubr.msk.f32.vlgmr.msra.gmra.mrb[6].mxu1 %vm567_vm3, %v737_v46  ;;  %v731_v39 = vmul.f32 %v2775_v23, %v3389_v20 }
 0x328   : > { %2555 = vmatpush3.bf16.msra.mxu1 %v2554_v57  ;;  %2453 = vmatprep.mubr.msk.f32.mxu1 %vm2970_vm6, %v2971_v6 }
 0x329   : > { %v708_v61 = vpop.xlane.xlu1 %707  ;;  %2559 = vmatprep.subr.bf16.mxu1 %v2967_v18 }
 0x32a   : > { %2784 = vrcp.f32 %v708_v61 }
 0x32b   : > { %2786 = vrcp.f32 %v675_v38  ;;  %2454 = vmatmul.mubr.msk.f32.vlgmr.msra.gmra.mrb[8].mxu1 %vm567_vm3, %v715_v33 }
 0x32c   : > { %v2777_v4 = vpop.eup %2776  ;;  %2788 = vrcp.f32 %v687_v51  ;;  %2561 = vmatpush3.bf16.msra.mxu1 %v2560_v58  ;;  %2467 = vmatprep.mubr.msk.f32.mxu1 %vm2970_vm6, %v2971_v6 }
 0x32d   : > { %v2779_v28 = vpop.eup %2778  ;;  %v739_v1 = vmul.f32 %v2777_v4, %v3419_v43  ;;  %v711_v21 = vpop.xlane.xlu1 %710  ;;  %2565 = vmatprep.subr.bf16.mxu1 %v2967_v18 }
 0x32e   : > { %v2781_v16 = vpop.eup %2780  ;;  %v717_v7 = vmul.f32 %v2779_v28, %v3382_v27  ;;  %2790 = vrcp.f32 %v711_v21 }
 0x32f   : > { %2468 = vmatmul.mubr.msk.f32.vlgmr.msra.gmra.mrb[10].mxu1 %vm567_vm3, %v731_v39  ;;  %2475 = vmatmul.mubr.msk.f32.vlgmr.msra.gmra.mrb[10].mxu0 %vm567_vm3, %v739_v1  ;;  %v725_v20 = vmul.f32 %v2781_v16, %v3406_v40  ;;  %v2783_v8 = vpop.eup %2782 }
 0x330   : > { %2567 = vmatpush3.bf16.msra.mxu1 %v2566_v45  ;;  %2570 = vmatpush3.bf16.msra.mxu0 %v2569_v13  ;;  %v733_v34 = vmul.f32 %v2783_v8, %v3414_v52 }
 0x331   : > { %2481 = vmatprep.mubr.msk.f32.mxu1 %vm2970_vm6, %v2971_v6  ;;  %2488 = vmatprep.mubr.msk.f32.mxu0 %vm2970_vm6, %v2971_v6  ;;  %v2722_v43 = vpop.permute.xlu1 %2721 }
 0x332   : > { %2571 = vmatprep.subr.bf16.mxu1 %v2967_v18  ;;  %2574 = vmatprep.subr.bf16.mxu0 %v2967_v18  ;;  %v2724_v40 = vunpack.i.h.bf16 %v2722_v43  ;;  %v2723_v14 = vunpack.i.l.bf16 %v2722_v43 }
 0x333   : > { %2482 = vmatmul.mubr.msk.f32.vlgmr.msra.gmra.mrb[12].mxu1 %vm567_vm3, %v717_v7  ;;  %2489 = vmatmul.mubr.msk.f32.vlgmr.msra.gmra.mrb[12].mxu0 %vm567_vm3, %v725_v20 }
 0x334   : > { %v2785_v27 = vpop.eup %2784  ;;  %2573 = vmatpush3.bf16.msra.mxu1 %v2572_v44  ;;  %2576 = vmatpush3.bf16.msra.mxu0 %v2575_v47  ;;  %v2584_v52 = vpack.c.bf16 %v2724_v40, %v2723_v14 }
 0x335   : > { %v2787_v15 = vpop.eup %2786  ;;  %v741_v29 = vmul.f32 %v2785_v27, %v3429_v56  ;;  %2495 = vmatprep.mubr.msk.f32.mxu1 %vm2970_vm6, %v2971_v6  ;;  %2502 = vmatprep.mubr.msk.f32.mxu0 %vm2970_vm6, %v2971_v6 }
 0x336   : > { %v2789_v26 = vpop.eup %2788  ;;  %2577 = vmatprep.subr.bf16.mxu1 %v2967_v18  ;;  %2580 = vmatprep.subr.bf16.mxu0 %v2967_v18  ;;  %v719_v56 = vmul.f32 %v2787_v15, %v3400_v54 }
 0x337   : > { %2496 = vmatmul.mubr.msk.f32.vlgmr.msra.gmra.mrb[14].mxu1 %vm567_vm3, %v733_v34  ;;  %2503 = vmatmul.mubr.msk.f32.vlgmr.msra.gmra.mrb[14].mxu0 %vm567_vm3, %v741_v29  ;;  %v727_v38 = vmul.f32 %v2789_v26, %v3425_v55 }
 0x338   : > { %2579 = vmatpush3.bf16.msra.mxu1 %v2578_v49  ;;  %2582 = vmatpush3.bf16.msra.mxu0 %v2581_v37  ;;  %v2791_v12 = vpop.eup %2790 }
 0x339   : > { %2509 = vmatprep.mubr.msk.f32.mxu1 %vm2970_vm6, %v2971_v6  ;;  %2516 = vmatprep.mubr.msk.f32.mxu0 %vm2970_vm6, %v2971_v6 }
 0x33a   : > { %2586 = vmatprep.subr.bf16.mxu0 %v2967_v18  ;;  %2583 = vmatprep.subr.bf16.mxu1 %v2967_v18  ;;  %v743_v18 = vmul.f32 %v2791_v12, %v3433_v24 }
 0x33b   : > { %2510 = vmatmul.mubr.msk.f32.vlgmr.msra.gmra.mrb[16].mxu1 %vm567_vm3, %v719_v56  ;;  %2517 = vmatmul.mubr.msk.f32.vlgmr.msra.gmra.mrb[16].mxu0 %vm567_vm3, %v727_v38 }
 0x33c   : > { %2585 = vmatpush3.bf16.msra.mxu1 %v2584_v52  ;;  %2530 = vmatprep.mubr.msk.f32.mxu0 %vm2970_vm6, %v2971_v6 }
 0x33d   : > { %2523 = vmatprep.mubr.msk.f32.mxu1 %vm2970_vm6, %v2971_v6 }
 0x351   : > { %v699_v54 = vpop.xlane.xlu0 %698 }
 0x352   : > { %2792 = vrcp.f32 %v699_v54 }
 0x355   : > { %v2727_v55 = vpop.permute.xlu0 %2726 }
 0x356   : > { %v2729_v60 = vunpack.i.h.bf16 %v2727_v55  ;;  %v2728_v11 = vunpack.i.l.bf16 %v2727_v55 }
 0x358   : > { %v2587_v63 = vpack.c.bf16 %v2729_v60, %v2728_v11 }
 0x35a   : > { %2588 = vmatpush3.bf16.msra.mxu0 %v2587_v63 }
 0x35c   : > { %v2793_v5 = vpop.eup %2792 }
 0x35d   : > { %v735_v41 = vmul.f32 %v2793_v5, %v3442_v2  ;;  %2531 = vmatmul.mubr.msk.f32.vlgmr.msra.gmra.mrb[18].mxu0 %vm567_vm3, %v743_v18 }
 0x35f   : > { %2524 = vmatmul.mubr.msk.f32.vlgmr.msra.gmra.mrb[18].mxu1 %vm567_vm3, %v735_v41 }
 0x3e1   : > { %v813_v36 = vpop.f32.mrb[0].mxu1 }
 0x3e2   : > { %v2427_v6 = vpop.f32.mrb[1].mxu1 }
 0x3e6   : > { %v886_v19 = vpop.f32.mrb[2].mxu1 }
 0x3e7   : > { %v2434_v10 = vpop.f32.mrb[3].mxu1 }
 0x3f1   : > { %v3548_v46 = vpop.f32.mrb[4].mxu1 }
 0x3f2   : > { %v2441_v50 = vpop.f32.mrb[5].mxu1 }
 0x3f6   : > { %v1190_v51 = vpop.f32.mrb[8].mxu0 }
 0x3f7   : > { %1990 = vrot.lane.b32.xlu0 %v1190_v51, %s2972_s10  ;;  %v2462_v31 = vpop.f32.mrb[9].mxu0 }
 0x3fa   : > { %v3550_v57 = vpop.f32.mrb[6].mxu1 }
 0x3fb   : > { %v2448_v24 = vpop.f32.mrb[7].mxu1 }
 0x3fe   : > { %v1111_v48 = vpop.f32.mrb[8].mxu1 }
 0x3ff   : > { %1988 = vrot.lane.b32.xlu1 %v1111_v48, %s2972_s10  ;;  %v2455_v2 = vpop.f32.mrb[9].mxu1 }
 0x402   : > { %v1269_v58 = vpop.f32.mrb[10].mxu1  ;;  %v1348_v33 = vpop.f32.mrb[10].mxu0 }
 0x403   : > { %1992 = vrot.lane.b32.xlu1 %v1269_v58, %s2972_s10  ;;  %v2469_v61 = vpop.f32.mrb[11].mxu1  ;;  %1994 = vrot.lane.b32.xlu0 %v1348_v33, %s2972_s10  ;;  %v2476_v23 = vpop.f32.mrb[11].mxu0 }
 0x406   : > { %v1427_v62 = vpop.f32.mrb[12].mxu1  ;;  %v1506_v0 = vpop.f32.mrb[12].mxu0 }
 0x407   : > { %v2483_v3 = vpop.f32.mrb[13].mxu1  ;;  %2004 = vrot.lane.b32.xlu0 %v1427_v62, %s2973_s9  ;;  %2006 = vrot.lane.b32.xlu1 %v1506_v0, %s2973_s9  ;;  %v2490_v4 = vpop.f32.mrb[13].mxu0 }
 0x40a   : > { %v1585_v17 = vpop.f32.mrb[14].mxu1  ;;  %v1664_v59 = vpop.f32.mrb[14].mxu0 }
 0x40b   : > { %v2497_v28 = vpop.f32.mrb[15].mxu1  ;;  %2008 = vrot.lane.b32.xlu1 %v1585_v17, %s2973_s9  ;;  %2010 = vrot.lane.b32.xlu0 %v1664_v59, %s2973_s9  ;;  %v2504_v42 = vpop.f32.mrb[15].mxu0 }
 0x40e   : > { %v1743_v30 = vpop.f32.mrb[16].mxu1  ;;  %v1822_v39 = vpop.f32.mrb[16].mxu0 }
 0x40f   : > { %2022 = vrot.lane.b32.xlu1 %v1822_v39, %s2974_s20  ;;  %v2518_v1 = vpop.f32.mrb[17].mxu0  ;;  %2020 = vrot.lane.b32.xlu0 %v1743_v30, %s2974_s20  ;;  %v2511_v21 = vpop.f32.mrb[17].mxu1 }
 0x430   : > { %v1980_v16 = vpop.f32.mrb[18].mxu0 }
 0x431   : > { %v2532_v13 = vpop.f32.mrb[19].mxu0  ;;  %2026 = vrot.lane.b32.xlu0 %v1980_v16, %s2974_s20 }
 0x432   : > { %v1901_v45 = vpop.f32.mrb[18].mxu1 }
 0x433   : > { %2024 = vrot.lane.b32.xlu1 %v1901_v45, %s2974_s20  ;;  %v2525_v44 = vpop.f32.mrb[19].mxu1 }
 0x469   : > { %v1991_v47 = vpop.permute.xlu0 %1990 }
 0x46a   : > { %v2034_v53 = vsel %vm2032_vm7, %v886_v19, %v1991_v47 }
 0x471   : > { %v1989_v7 = vpop.permute.xlu1 %1988 }
 0x472   : > { %v2033_v27 = vsel %vm2032_vm7, %v813_v36, %v1989_v7 }
 0x475   : > { %v1995_v20 = vpop.permute.xlu0 %1994  ;;  %v1993_v43 = vpop.permute.xlu1 %1992 }
 0x476   : > { %v2036_v48 = vsel %vm2032_vm7, %v3550_v57, %v1995_v20  ;;  %v2035_v2 = vsel %vm2032_vm7, %v3548_v46, %v1993_v43 }
 0x479   : > { %v2005_v8 = vpop.permute.xlu0 %2004  ;;  %v2007_v9 = vpop.permute.xlu1 %2006 }
 0x47a   : > { %v2037_v40 = vsel %vm567_vm3, %v2033_v27, %v2005_v8  ;;  %v2038_v14 = vsel %vm567_vm3, %v2034_v53, %v2007_v9 }
 0x47d   : > { %v2011_v22 = vpop.permute.xlu0 %2010  ;;  %v2009_v25 = vpop.permute.xlu1 %2008 }
 0x47e   : > { %v2040_v58 = vsel %vm567_vm3, %v2036_v48, %v2011_v22  ;;  %v2039_v61 = vsel %vm567_vm3, %v2035_v2, %v2009_v25 }
 0x481   : > { %v2023_v15 = vpop.permute.xlu1 %2022  ;;  %v2021_v34 = vpop.permute.xlu0 %2020 }
 0x482   : > { %v2043_v29 = vsel %vm2041_vm8, %v2038_v14, %v2023_v15  ;;  %v2042_v26 = vsel %vm2041_vm8, %v2037_v40, %v2021_v34 }
 0x483   : > { %v2069_v49 = vrot.slane %v2042_v26, 2  ;;  %v2070_v37 = vrot.slane %v2043_v29, 1  ;;  %v2095_v52 = vrot.slane %v2042_v26, 5  ;;  %v2096_v56 = vrot.slane %v2043_v29, 4 }
 0x484   : > { %v2060_v38 = vrot.slane %v2042_v26, 1  ;;  %v2105_v54 = vrot.slane %v2042_v26, 6  ;;  %v2106_v55 = vrot.slane %v2043_v29, 5  ;;  %v2078_v60 = vrot.slane %v2042_v26, 3 }
 0x485   : > { %v2071_v11 = vsel %vm2051_vm9, %v2070_v37, %v2069_v49  ;;  %v2097_v12 = vsel %vm2051_vm9, %v2096_v56, %v2095_v52  ;;  %v2079_v63 = vrot.slane %v2043_v29, 2  ;;  %v2115_v18 = vrot.slane %v2042_v26, 7 }
 0x486   : > { %v2061_v5 = vsel %vm2051_vm9, %v2043_v29, %v2060_v38  ;;  %v2107_v41 = vsel %vm2051_vm9, %v2106_v55, %v2105_v54  ;;  %v2116_v36 = vrot.slane %v2043_v29, 6  ;;  %v2087_v6 = vrot.slane %v2042_v26, 4 }
 0x487   : > { %v2080_v19 = vsel %vm2051_vm9, %v2079_v63, %v2078_v60  ;;  %v2088_v10 = vrot.slane %v2043_v29, 3  ;;  %v2050_v50 = vrot.slane %v2043_v29, 7  ;;  %v2978_v49 = vmov 1966171168  }
 0x488   : > { %v2117_v51 = vsel %vm2051_vm9, %v2116_v36, %v2115_v18  ;;  %v2137_v37 = vunpack.c.l.s4 %v2978_v49 }
 0x489   : > { %v2089_v31 = vsel %vm2051_vm9, %v2088_v10, %v2087_v6  ;;  %v2052_v24 = vsel %vm2051_vm9, %v2050_v50, %v2042_v26 }
 0x48a   : > { %v2138_v38 = vunpack.c.0.s8 %v2137_v37 }
 0x48c   : > { %v2141_v63 = vsub.s32 %v2138_v38, %v3271_v35 }
 0x4a3   : > { %v2027_v33 = vpop.permute.xlu0 %2026 }
 0x4a4   : > { %v2045_v23 = vsel %vm2041_vm8, %v2040_v58, %v2027_v33 }
 0x4a5   : > { %v2025_v62 = vpop.permute.xlu1 %2024  ;;  %v2073_v0 = vrot.slane %v2045_v23, 7  ;;  %v2100_v3 = vrot.slane %v2045_v23, 2  ;;  %v2064_v4 = vrot.slane %v2045_v23, 6  ;;  %v2110_v17 = vrot.slane %v2045_v23, 3 }
 0x4a6   : > { %v2044_v59 = vsel %vm2041_vm8, %v2039_v61, %v2025_v62  ;;  %v2120_v57 = vrot.slane %v2045_v23, 4  ;;  %v2092_v28 = vrot.slane %v2045_v23, 1  ;;  %v2056_v42 = vrot.slane %v2045_v23, 5 }
 0x4a7   : > { %v2072_v46 = vsel %vm2054_vm10, %v2044_v59, %v2071_v11  ;;  %v2098_v30 = vrot.slane %v2044_v59, 3  ;;  %v2062_v39 = vrot.slane %v2044_v59, 7  ;;  %v2108_v1 = vrot.slane %v2044_v59, 4 }
 0x4a8   : > { %v2074_v21 = vsel %vm2057_vm11, %v2073_v0, %v2072_v46  ;;  %v2081_v16 = vrot.slane %v2044_v59, 1  ;;  %v2118_v13 = vrot.slane %v2044_v59, 5  ;;  %v2090_v45 = vrot.slane %v2044_v59, 2 }
 0x4a9   : > { %2075 = vrot.lane.b32.xlu1 %v2074_v21, %s2975_s29  ;;  %v2099_v44 = vsel %vm2054_vm10, %v2098_v30, %v2097_v12  ;;  %v2063_v47 = vsel %vm2054_vm10, %v2062_v39, %v2061_v5  ;;  %v2109_v7 = vsel %vm2054_vm10, %v2108_v1, %v2107_v41  ;;  %v2053_v20 = vrot.slane %v2044_v59, 6 }
 0x4aa   : > { %v2101_v43 = vsel %vm2057_vm11, %v2100_v3, %v2099_v44  ;;  %v2065_v8 = vsel %vm2057_vm11, %v2064_v4, %v2063_v47  ;;  %v2111_v9 = vsel %vm2057_vm11, %v2110_v17, %v2109_v7  ;;  %v2082_v22 = vsel %vm2054_vm10, %v2081_v16, %v2080_v19 }
 0x4ab   : > { %2102 = vrot.lane.b32.xlu0 %v2101_v43, %s2976_s4  ;;  %v2083_v25 = vsel %vm2057_vm11, %v2045_v23, %v2082_v22  ;;  %v2119_v53 = vsel %vm2054_vm10, %v2118_v13, %v2117_v51  ;;  %v2091_v27 = vsel %vm2054_vm10, %v2090_v45, %v2089_v31  ;;  %v2055_v40 = vsel %vm2054_vm10, %v2053_v20, %v2052_v24 }
 0x4ac   : > { %v2121_v14 = vsel %vm2057_vm11, %v2120_v57, %v2119_v53  ;;  %v2093_v15 = vsel %vm2057_vm11, %v2092_v28, %v2091_v27  ;;  %v2058_v34 = vsel %vm2057_vm11, %v2056_v42, %v2055_v40 }
 0x4ad   : > { %2066 = vrot.lane.b32.xlu1 %v2065_v8, %s2976_s4 }
 0x4af   : > { %2112 = vrot.lane.b32.xlu0 %v2111_v9, %s2975_s29 }
 0x4b1   : > { %2084 = vrot.lane.b32.xlu1 %v2083_v25, %s2977_s21 }
 0x4b3   : > { %2122 = vrot.lane.b32.xlu0 %v2121_v14, %s2977_s21 }
 0x51b   : > { %v2076_v29 = vpop.permute.xlu1 %2075 }
 0x51d   : > { %v2103_v26 = vpop.permute.xlu0 %2102 }
 0x51e   : > { %v2130_v60 = vsel %vm257_vm0, %v2093_v15, %v2103_v26 }
 0x51f   : > { %v2067_v52 = vpop.permute.xlu1 %2066 }
 0x520   : > { %v2125_v54 = vsel %vm257_vm0, %v2058_v34, %v2067_v52 }
 0x521   : > { %v2113_v56 = vpop.permute.xlu0 %2112  ;;  %v2127_v12 = vsel %vm2126_vm12, %v2125_v54, %v2076_v29 }
 0x522   : > { %v2131_v11 = vsel %vm2126_vm12, %v2130_v60, %v2113_v56 }
 0x523   : > { %v2085_v55 = vpop.permute.xlu1 %2084 }
 0x524   : > { %v2129_v5 = vsel %vm2128_vm13, %v2127_v12, %v2085_v55 }
 0x525   : > { %v2123_v18 = vpop.permute.xlu0 %2122 }
 0x526   : > { %v2132_v41 = vsel %vm2128_vm13, %v2131_v11, %v2123_v18 }
 0x527   : > { %v2135_v36 = vcombine.low %v2129_v5, %v2132_v41 }
 0x529   : > { %v2142_v6 = vrot.slane %v2135_v36, %v2141_v63 }
 0x52b   : > { %v2143_v19 = vcombine.high %v2142_v6, %v2142_v6  ;;  %v2150_v10 = vrot.slane %v2142_v6, %v2141_v63 }
 0x52d   : > { %v2157_v50 = vrot.slane %v2143_v19, %v2141_v63  ;;  %v2158_v51 = vcombine.high %v2150_v10, %v2150_v10  ;;  %2168 = vst.msk [vmem:[%s241_s11] sm:$0x3] %vm2166_vm14, %v2150_v10 }
 0x52f   : > { %v2159_v35 = vcombine.high %v2157_v50, %v2157_v50  ;;  %2169 = vst.msk [vmem:[%s241_s11 + $0x2] sm:$0x3] %vm2166_vm14, %v2157_v50  ;;  %2170 = vst.msk [vmem:[%s241_s11 + $0x4] sm:$0x3] %vm2166_vm14, %v2158_v51 }
 0x531   : > { %2171 = vst.msk [vmem:[%s241_s11 + $0x6] sm:$0x3] %vm2166_vm14, %v2159_v35 }
 0x532   : > { %2895 = shalt.err (!%p2892_p3)
}
 0x533   : > { %s2896_s10 = scalar_lea.hbm %s3601_s30, 128  ;;  %s2900_s29 = scalar_lea.hbm %s3651_s3, 512 }
 0x534   : > { %p2897_p10 = scmp.ne.s32.totalorder %s3601_s30, %s2896_s10  ;;  %p2901_p13 = scmp.lt.u32.totalorder %s3601_s30, %s3651_s3 }
 0x535   : > { %p2902_p12 = scmp.lt.u32.totalorder %s2900_s29, %s2896_s10  ;;  %p2904_p6 = scmp.lt.u32.totalorder %s2896_s10, %s3601_s30 }
 0x536   : > { %p2898_p8 = pnand %p2897_p10, %p3670_p11 }
 0x537   : > { %p2903_p4 = por %p2902_p12, %p2901_p13 }
 0x538   : > { %p2899_p7 = pneg %p2898_p8 }
 0x539   : > { %p2905_p2 = por %p2904_p6, %p2903_p4 }
 0x53b   : > { %p2906_p5 = pnand %p2905_p2, %p2899_p7 }
 0x53d   : > { %2909 = shalt.err (!%p2906_p5)
}
 0x53e   : > { %s2980_s24 = smov 2  }
 0x53f   : > { %2597 = dma.vmem_to_hbm [thread:$0]  (%p3670_p11), %s3603_s18, 128, %s3601_s30, %s2173_s25, %s2976_s4, %s2976_s4, %s2980_s24  }
 0x540 PF: > { %p2617_p0 = scmp.ge.s32.totalorder %s2956_s15, 2  ;;  %s2202_s11 = sand.u32 1, %s2944_s12  }
 0x541   : > { %p3671_p9 = scmp.ne.s32.totalorder %s3661_s28, 0  ;;  %s2203_s17 = scalar_lea.sflag [#allocation4], %s2202_s11 }
 0x543   : > { %p2611_p1 = pnand %p2617_p0, %p3671_p9 }
 0x545   : > { %2939 = dma.done.wait (!%p2611_p1), %s2203_s17, 128  }
 0x546   : > { %2941 = vsyncadd (!%p2611_p1), %s2203_s17, 4294967168  ;;  %p17_p3 = scmp.ge.s32.totalorder %s3022_s16, 6   ;;  %s3672_s12 = smov %s2948_s13 }
 0x547   : > { %s3673_s13 = smov %s2952_s14  ;;  %s3674_s14 = smov %s3031_s19 }
 0x548   : > { %s3675_s15 = smov %s3022_s16  ;;  %19 = sbr.rel (!%p17_p3) target bundleno = 6 (0x6), region = 92 }
 0x54f   :  { %2208 = vsyncpa [#allocation3], 1 }
 0x550   :  { %2210 = vsyncpa [#allocation3 + $0x1], 1 }
 0x551   :  { %2211 = vsyncpa [#allocation6], 1 }
 0x552   :  { %2212 = vsyncpa [#allocation4], 1 }
 0x553   :  { %2214 = vsyncpa [#allocation4 + $0x1], 1 }

</bundles_post_ra>
